<compile_context>
chip_gen: v7x
topology: tpu7x:2x2x1
jax: 0.10.0
libtpu: 0.0.40
codegen_flags: <defaults>
</compile_context>

<pallas_src>
import functools
import math

import jax
import jax.numpy as jnp
from jax import lax
from jax.experimental import pallas as pl
from jax.experimental.pallas import tpu as pltpu

LANES = 128
SUBLANES = 8
DEFAULT_SUB_ROWS = 256        # rows per in-kernel chunk (128 KiB f32 live-set slices)
MAX_ROW_BLOCK = 8192          # rows per DMA block (4 MiB per stream per buffer at f32)
RESIDENT_PW_MAX_ROWS = 1024   # largest pos_weight row-period kept resident in VMEM
VMEM_LIMIT_BYTES = 32 * 1024 * 1024  # explicit; covers v5e's 16 MiB default scoped VMEM


def _cdiv(a, b):
    return -(-a // b)


def _round_up(a, b):
    return _cdiv(a, b) * b


def _focal_kernel(*refs, gamma, pw_mode, fast_pt, sub_rows, n_chunks,
                  npc, nblocks, has_skip, tail_block, tail_valid):
    """One grid step: stream a (n_chunks*sub_rows, 128) block of logits/targets
    and accumulate sum(focal) into a per-split (8, 128) partial-sum block."""
    if pw_mode == "none":
        x_ref, t_ref, out_ref = refs
        pw_ref = None
    else:
        x_ref, t_ref, pw_ref, out_ref = refs

    c = pl.program_id(0)          # split (megacore-parallel axis)
    i = pl.program_id(1)          # reduction step within the split
    gidx = c * npc + i            # global block index (small; int32-safe)

    @pl.when(i == 0)
    def _init():
        out_ref[...] = jnp.zeros_like(out_ref)

    def chunk_focal(j):
        """Focal values for sub-chunk j of this block, shape (sub_rows, 128)."""
        start = pl.multiple_of(j * sub_rows, sub_rows)
        x = x_ref[pl.ds(start, sub_rows), :].astype(jnp.float32)
        t = t_ref[pl.ds(start, sub_rows), :].astype(jnp.float32)

        # Numerically stable BCE-with-logits (matches torch incl. pos_weight):
        #   bce = (1 - t) * x + (1 + (pw - 1) * t) * softplus(-x)
        e = jnp.exp(-jnp.abs(x))                        # transcendental #1
        sp_negx = jnp.maximum(-x, 0.0) + jnp.log1p(e)   # transcendental #2
        if pw_mode == "none":
            bce = (1.0 - t) * x + sp_negx
        else:
            if pw_mode == "resident":
                pw = pw_ref[...].astype(jnp.float32)    # (sub_rows, 128) VMEM-resident tile
            else:  # "streamed" fallback
                pw = pw_ref[pl.ds(start, sub_rows), :].astype(jnp.float32)
            bce = (1.0 - t) * x + (1.0 + (pw - 1.0) * t) * sp_negx

        if fast_pt:
            # Binary targets, no pos_weight: pt == sigmoid(x) if t==1 else 1-sigmoid(x).
            # Reuses e = exp(-|x|) -> only 2 transcendentals per element.
            # (pl.reciprocal(approx=True) would shave more but loosens accuracy.)
            sig = jnp.where(x >= 0.0, 1.0, e) * pl.reciprocal(1.0 + e, approx=False)
            pt = t * sig + (1.0 - t) * (1.0 - sig)
        else:
            pt = jnp.exp(-bce)                          # transcendental #3 (exact/general)

        one_m_pt = 1.0 - pt
        g = float(gamma)
        if g == 2.0:
            mod = one_m_pt * one_m_pt
        elif g.is_integer() and g >= 0.0:
            gi = int(g)
            if gi == 0:
                mod = jnp.ones_like(one_m_pt)
            else:
                mod = one_m_pt
                for _ in range(gi - 1):
                    mod = mod * one_m_pt
        else:
            # clamp avoids NaN from tiny negative (1 - pt) under fractional gamma
            # (documented divergence from the unclamped torch expression).
            mod = jnp.maximum(one_m_pt, 0.0) ** jnp.float32(g)
        return mod * bce          # alpha and 1/N are applied once in the wrapper

    def accumulate(vals):
        # (sub_rows, 128) -> (sub_rows/8, 8, 128) -> VPU adds into the (8, 128) block
        out_ref[...] += vals.reshape(-1, SUBLANES, LANES).sum(axis=0)

    def full_block():
        @pl.loop(0, n_chunks)
        def _(j):
            accumulate(chunk_focal(j))

    has_tail = tail_block < nblocks
    if (not has_tail) and (not has_skip):
        full_block()              # every block fully valid: no predication at all
    else:
        full_upto = tail_block if has_tail else nblocks
        if full_upto > 0:
            @pl.when(gidx < full_upto)
            def _steady():
                full_block()

        if has_tail:
            sub_elems = sub_rows * LANES
            n_tail_chunks = _cdiv(tail_valid, sub_elems)  # static; chunks past it skipped

            @pl.when(gidx == tail_block)
            def _tail():
                @pl.loop(0, n_tail_chunks)
                def _(j):
                    vals = chunk_focal(j)
                    rows = lax.broadcasted_iota(jnp.int32, vals.shape, 0)
                    lanes = lax.broadcasted_iota(jnp.int32, vals.shape, 1)
                    flat = j * sub_elems + rows * LANES + lanes  # block-local: < 2**31
                    accumulate(jnp.where(flat < tail_valid, vals, 0.0))
        # gidx beyond the last real block (split round-up duplicate): no work.


def binary_focal_loss(inputs, targets, pos_weight=None, training=True, *,
                      gamma=2.0, alpha=1.0, assume_binary_targets=False,
                      max_row_block=MAX_ROW_BLOCK, sub_rows=DEFAULT_SUB_ROWS):
    """Pallas-backed equivalent of BinaryFocalLoss.forward (mean reduction).

    Inputs/targets are streamed in their original dtypes (pass bf16/int8
    targets to shrink that stream; exact for binary {0,1} targets).  Set
    `assume_binary_targets=True` (with no pos_weight) for the 2-transcendental
    pt fast path. Wrap in jax.jit with the non-array kwargs static.
    """
    n_valid = int(inputs.size)
    if n_valid == 0:
        return jnp.float32(float("nan"))   # torch: mean of an empty tensor is NaN

    use_pw = (pos_weight is not None) and training
    fast_pt = bool(assume_binary_targets) and not use_pw

    # ---- pos_weight pattern analysis (shapes only; all static) -------------
    pw_mode = "none"
    pw_pattern = None
    rows_period = 1
    if use_pw:
        pw = jnp.asarray(pos_weight, dtype=jnp.float32)
        if pw.ndim > inputs.ndim:
            raise ValueError("pos_weight has more dims than inputs")
        trail_shape = inputs.shape[inputs.ndim - pw.ndim:] if pw.ndim else ()
        period = 1
        for d in trail_shape:
            period *= int(d)
        period = max(period, 1)
        rows_period = math.lcm(period, LANES) // LANES
        if rows_period <= RESIDENT_PW_MAX_ROWS:
            pw_mode = "resident"
            pw_pattern = jnp.broadcast_to(pw, trail_shape).reshape(-1)
        else:
            # TODO(synk): huge-period pos_weight still streams a full-size slab.
            pw_mode = "streamed"

    # ---- static tiling ------------------------------------------------------
    rows_slab = _cdiv(n_valid, LANES)
    unit = math.lcm(SUBLANES, rows_period) if pw_mode == "resident" else SUBLANES
    sub_rows_eff = _round_up(min(int(sub_rows), _round_up(rows_slab, SUBLANES)), unit)
    n_chunks = max(1, min(int(max_row_block) // sub_rows_eff,
                          _cdiv(rows_slab, sub_rows_eff)))
    row_block = n_chunks * sub_rows_eff
    block_elems = row_block * LANES
    nblocks = _cdiv(rows_slab, row_block)
    num_splits = 2 if nblocks >= 2 else 1    # megacore chips shard the leading axis
    npc = _cdiv(nblocks, num_splits)
    has_skip = num_splits * npc > nblocks    # at most one duplicate (clamped) block

    tail_block = n_valid // block_elems      # == nblocks when exactly divisible
    tail_valid = n_valid - tail_block * block_elems

    # ---- lane-dense slabs (zero-copy when numel % 128 == 0) -----------------
    def to_slab(a):
        if n_valid % LANES == 0:
            return a.reshape(rows_slab, LANES)   # pure reshape, no HBM copy
        # TODO(synk): lane-ragged sizes still pay one wrapper pad copy per stream.
        flat = a.reshape(-1)
        rows_target = nblocks * row_block
        flat = jnp.pad(flat, (0, rows_target * LANES - n_valid))
        return flat.reshape(rows_target, LANES)

    stream_spec = pl.BlockSpec(
        (row_block, LANES),
        lambda c, i: (jnp.minimum(c * npc + i, nblocks - 1), 0))

    args = [to_slab(inputs), to_slab(targets)]
    in_specs = [stream_spec, stream_spec]

    if pw_mode == "resident":
        # (sub_rows_eff, 128) tile covering lcm(period, 128): valid for every
        # chunk because chunk start rows are multiples of the row period.
        reps = (sub_rows_eff * LANES) // int(pw_pattern.size)
        pw_tile = jnp.tile(pw_pattern, reps).reshape(sub_rows_eff, LANES)
        args.append(pw_tile)
        in_specs.append(pl.BlockSpec((sub_rows_eff, LANES), lambda c, i: (0, 0)))
    elif pw_mode == "streamed":
        pw_full = jnp.broadcast_to(jnp.asarray(pos_weight, jnp.float32), inputs.shape)
        args.append(to_slab(pw_full))
        in_specs.append(stream_spec)

    kernel = functools.partial(
        _focal_kernel,
        gamma=float(gamma), pw_mode=pw_mode, fast_pt=fast_pt,
        sub_rows=sub_rows_eff, n_chunks=n_chunks, npc=npc, nblocks=nblocks,
        has_skip=has_skip, tail_block=tail_block, tail_valid=tail_valid)

    out_bytes = num_splits * SUBLANES * LANES * 4
    cost = pl.CostEstimate(
        flops=20 * n_valid,
        transcendentals=(2 if fast_pt else 3) * n_valid,
        bytes_accessed=sum(int(a.size) * a.dtype.itemsize for a in args) + out_bytes)

    partials = pl.pallas_call(
        kernel,
        out_shape=jax.ShapeDtypeStruct((num_splits, SUBLANES, LANES), jnp.float32),
        grid_spec=pltpu.PrefetchScalarGridSpec(
            num_scalar_prefetch=0,
            grid=(num_splits, npc),
            in_specs=in_specs,
            out_specs=pl.BlockSpec((None, SUBLANES, LANES), lambda c, i: (c, 0, 0)),
        ),
        compiler_params=pltpu.CompilerParams(
            dimension_semantics=("parallel", "arbitrary"),
            vmem_limit_bytes=VMEM_LIMIT_BYTES),
        cost_estimate=cost,
    )(*args)

    # Tiny epilogue: cross-lane reduce + alpha + 1/N on the (num_splits, 8, 128)
    # partial sums, done once in the wrapper.
    total = jnp.sum(partials, dtype=jnp.float32)
    return (jnp.float32(alpha) * total) / jnp.float32(n_valid)


def _reference(inputs, targets, pos_weight, training, gamma=2.0, alpha=1.0):
    """Pure-JAX reference of the PyTorch forward (for verification)."""
    x = inputs.astype(jnp.float32)
    t = targets.astype(jnp.float32)
    if (pos_weight is not None) and training:
        pw = jnp.broadcast_to(jnp.asarray(pos_weight, jnp.float32), x.shape)
    else:
        pw = jnp.ones_like(x)
    sp_negx = jnp.maximum(-x, 0.0) + jnp.log1p(jnp.exp(-jnp.abs(x)))
    bce = (1.0 - t) * x + (1.0 + (pw - 1.0) * t) * sp_negx
    pt = jnp.exp(-bce)
    return jnp.mean(alpha * (1.0 - pt) ** gamma * bce)


if __name__ == "__main__":
    key = jax.random.PRNGKey(0)
    k1, k2, k3, k4, k5, k6, k7, k8 = jax.random.split(key, 8)

    loss_fn = jax.jit(
        binary_focal_loss,
        static_argnames=("training", "gamma", "alpha", "assume_binary_targets",
                         "max_row_block", "sub_rows"))

    # 1) NCHW, training=True, per-W pos_weight (resident pw tile, zero-copy slab).
    B, C, H, W = 2, 4, 16, 16
    x = jax.random.normal(k1, (B, C, H, W), dtype=jnp.float32)          # logits
    t = (jax.random.uniform(k2, (B, C, H, W)) > 0.5).astype(jnp.float32)
    pw = jnp.linspace(0.5, 2.0, W, dtype=jnp.float32)
    out = jax.block_until_ready(loss_fn(x, t, pw, training=True))
    ref = _reference(x, t, pw, True)
    assert jnp.allclose(out, ref, atol=1e-5, rtol=1e-5), (out, ref)

    # 2) Eval mode (pos_weight disabled via the `training` flag, as in the module).
    out_e = jax.block_until_ready(loss_fn(x, t, pw, training=False))
    ref_e = _reference(x, t, pw, False)
    assert jnp.allclose(out_e, ref_e, atol=1e-5, rtol=1e-5), (out_e, ref_e)

    # 3) Ragged size (in-kernel tail mask + lane-pad path) with a pos_weight whose
    #    broadcast period (11) does not divide 128 (lcm-sized resident pw tile).
    shp = (3, 5, 7, 11)
    x2 = jax.random.normal(k3, shp, dtype=jnp.float32)
    t2 = (jax.random.uniform(k4, shp) > 0.5).astype(jnp.float32)
    pw2 = jnp.linspace(0.25, 3.0, shp[-1], dtype=jnp.float32)
    out2 = jax.block_until_ready(loss_fn(x2, t2, pw2, training=True))
    ref2 = _reference(x2, t2, pw2, True)
    assert jnp.allclose(out2, ref2, atol=1e-5, rtol=1e-5), (out2, ref2)

    # 4) bf16 binary targets (half the target stream) + 2-transcendental fast path.
    shp3 = (2, 4, 64, 64)
    x3 = jax.random.normal(k5, shp3, dtype=jnp.float32)
    t3 = (jax.random.uniform(k6, shp3) > 0.5).astype(jnp.bfloat16)
    out3 = jax.block_until_ready(
        loss_fn(x3, t3, None, training=True, assume_binary_targets=True))
    ref3 = _reference(x3, t3, None, True)
    assert jnp.allclose(out3, ref3, atol=1e-5, rtol=1e-4), (out3, ref3)

    # 5) Multi-block grid with a 2-way split (one clamped duplicate block skipped),
    #    multi-chunk in-kernel loop, tail masking, scalar pos_weight — small tiling
    #    forced via static kwargs to exercise every kernel path.
    shp4 = (3, 4, 48, 128)
    x4 = jax.random.normal(k7, shp4, dtype=jnp.float32)
    t4 = (jax.random.uniform(k8, shp4) > 0.5).astype(jnp.float32)
    pw4 = jnp.float32(1.5)
    out4 = jax.block_until_ready(
        loss_fn(x4, t4, pw4, training=True, max_row_block=128, sub_rows=64))
    ref4 = _reference(x4, t4, pw4, True)
    assert jnp.allclose(out4, ref4, atol=1e-5, rtol=1e-5), (out4, ref4)

    print("KERNEL_OK")
</pallas_src>

<mosaic_0001>
module attributes {stable_mosaic.version = 11 : i64} {
  func.func @_focal_kernel(%arg0: i32, %arg1: i32, %arg2: memref<16x128xf32, #tpu.memory_space<vmem>>, %arg3: memref<16x128xf32, #tpu.memory_space<vmem>>, %arg4: memref<16x128xf32, #tpu.memory_space<vmem>>, %arg5: memref<1x8x128xf32, #tpu.memory_space<vmem>>) attributes {dimension_semantics = [#tpu.dimension_semantics<parallel>, #tpu.dimension_semantics<arbitrary>], iteration_bounds = array<i64: 1, 1>, scalar_prefetch = 0 : i64, scratch_operands = 0 : i64, tpu.core_type = #tpu.core_type<tc>, window_params = [{transform_indices = @transform_0, window_bounds = array<i64: 16, 128>}, {transform_indices = @transform_1, window_bounds = array<i64: 16, 128>}, {pipeline_mode = #tpu.pipeline_mode<synchronous>, transform_indices = @transform_2, window_bounds = array<i64: 16, 128>}, {transform_indices = @transform_3, window_bounds = array<i64: 1, 8, 128>}]} {
    %c0_i32 = arith.constant 0 : i32
    %0 = arith.cmpi eq, %arg1, %c0_i32 : i32
    %1 = arith.extui %0 : i1 to i32
    %c0_i32_0 = arith.constant 0 : i32
    %2 = arith.cmpi ne, %1, %c0_i32_0 : i32
    scf.if %2 {
      %cst_21 = arith.constant 0.000000e+00 : f32
      %47 = vector.broadcast %cst_21 : f32 to vector<8x128xf32>
      %c0_22 = arith.constant 0 : index
      %c0_23 = arith.constant 0 : index
      %c0_24 = arith.constant 0 : index
      %48 = vector.load %arg5[%c0_22, %c0_23, %c0_24] : memref<1x8x128xf32, #tpu.memory_space<vmem>>, vector<1x8x128xf32>
      %49 = vector.shape_cast %48 : vector<1x8x128xf32> to vector<8x128xf32>
      %50 = vector.shape_cast %47 : vector<8x128xf32> to vector<1x8x128xf32>
      tpu.vector_store %arg5[%c0_22, %c0_23, %c0_24], %50 {strides = array<i32>} : memref<1x8x128xf32, #tpu.memory_space<vmem>>, vector<1x8x128xf32>,
    } else {
    }
    %c0_i32_1 = arith.constant 0 : i32
    %c1_i32 = arith.constant 1 : i32
    %3 = arith.muli %c0_i32_1, %c1_i32 : i32
    %c0_i32_2 = arith.constant 0 : i32
    %4 = arith.addi %c0_i32_2, %3 : i32
    %c16_i32 = arith.constant 16 : i32
    %5 = arith.muli %4, %c16_i32 : i32
    %6 = tpu.assume_multiple %5, 16 : i32
    %7 = arith.index_cast %6 : i32 to index
    %c0 = arith.constant 0 : index
    %8 = vector.load %arg2[%7, %c0] : memref<16x128xf32, #tpu.memory_space<vmem>>, vector<16x128xf32>
    %9 = arith.index_cast %6 : i32 to index
    %c0_3 = arith.constant 0 : index
    %10 = vector.load %arg3[%9, %c0_3] : memref<16x128xf32, #tpu.memory_space<vmem>>, vector<16x128xf32>
    %11 = math.absf %8 : vector<16x128xf32>
    %cst = arith.constant 0.000000e+00 : f32
    %12 = vector.broadcast %cst : f32 to vector<16x128xf32>
    %13 = arith.subf %12, %11 : vector<16x128xf32>
    %14 = math.exp %13 : vector<16x128xf32>
    %cst_4 = arith.constant 0.000000e+00 : f32
    %15 = vector.broadcast %cst_4 : f32 to vector<16x128xf32>
    %16 = arith.subf %15, %8 : vector<16x128xf32>
    %cst_5 = arith.constant 0.000000e+00 : f32
    %17 = vector.broadcast %cst_5 : f32 to vector<16x128xf32>
    %18 = arith.maximumf %16, %17 : vector<16x128xf32>
    %19 = math.log1p %14 : vector<16x128xf32>
    %20 = arith.addf %18, %19 : vector<16x128xf32>
    %c0_6 = arith.constant 0 : index
    %c0_7 = arith.constant 0 : index
    %21 = vector.load %arg4[%c0_6, %c0_7] : memref<16x128xf32, #tpu.memory_space<vmem>>, vector<16x128xf32>
    %cst_8 = arith.constant 1.000000e+00 : f32
    %22 = vector.broadcast %cst_8 : f32 to vector<16x128xf32>
    %23 = arith.subf %22, %10 : vector<16x128xf32>
    %24 = arith.mulf %23, %8 : vector<16x128xf32>
    %cst_9 = arith.constant 1.000000e+00 : f32
    %25 = vector.broadcast %cst_9 : f32 to vector<16x128xf32>
    %26 = arith.subf %21, %25 : vector<16x128xf32>
    %27 = arith.mulf %26, %10 : vector<16x128xf32>
    %cst_10 = arith.constant 1.000000e+00 : f32
    %28 = vector.broadcast %cst_10 : f32 to vector<16x128xf32>
    %29 = arith.addf %28, %27 : vector<16x128xf32>
    %30 = arith.mulf %29, %20 : vector<16x128xf32>
    %31 = arith.addf %24, %30 : vector<16x128xf32>
    %cst_11 = arith.constant 0.000000e+00 : f32
    %32 = vector.broadcast %cst_11 : f32 to vector<16x128xf32>
    %33 = arith.subf %32, %31 : vector<16x128xf32>
    %34 = math.exp %33 : vector<16x128xf32>
    %cst_12 = arith.constant 1.000000e+00 : f32
    %35 = vector.broadcast %cst_12 : f32 to vector<16x128xf32>
    %36 = arith.subf %35, %34 : vector<16x128xf32>
    %37 = arith.mulf %36, %36 : vector<16x128xf32>
    %38 = arith.mulf %37, %31 : vector<16x128xf32>
    %c0_13 = arith.constant 0 : index
    %c0_14 = arith.constant 0 : index
    %c0_15 = arith.constant 0 : index
    %39 = vector.load %arg5[%c0_13, %c0_14, %c0_15] : memref<1x8x128xf32, #tpu.memory_space<vmem>>, vector<1x8x128xf32>
    %40 = vector.shape_cast %39 : vector<1x8x128xf32> to vector<8x128xf32>
    %41 = vector.shape_cast %38 : vector<16x128xf32> to vector<2x8x128xf32>
    %cst_16 = arith.constant dense<0.000000e+00> : vector<8x128xf32>
    %42 = vector.multi_reduction <add>, %41, %cst_16 [0] : vector<2x8x128xf32> to vector<8x128xf32>
    %43 = arith.addf %40, %42 : vector<8x128xf32>
    %c0_17 = arith.constant 0 : index
    %c0_18 = arith.constant 0 : index
    %c0_19 = arith.constant 0 : index
    %44 = vector.load %arg5[%c0_17, %c0_18, %c0_19] : memref<1x8x128xf32, #tpu.memory_space<vmem>>, vector<1x8x128xf32>
    %45 = vector.shape_cast %44 : vector<1x8x128xf32> to vector<8x128xf32>
    %46 = vector.shape_cast %43 : vector<8x128xf32> to vector<1x8x128xf32>
    tpu.vector_store %arg5[%c0_17, %c0_18, %c0_19], %46 {strides = array<i32>} : memref<1x8x128xf32, #tpu.memory_space<vmem>>, vector<1x8x128xf32>,
    %c1_i32_20 = arith.constant 1 : i32
    return
  }
  func.func @transform_0(%arg0: i32, %arg1: i32) -> (i32, i32) {
    %c1_i32 = arith.constant 1 : i32
    %0 = arith.muli %arg0, %c1_i32 : i32
    %1 = arith.addi %0, %arg1 : i32
    %c0_i32 = arith.constant 0 : i32
    %2 = arith.minsi %1, %c0_i32 : i32
    %c0_i32_0 = arith.constant 0 : i32
    %c0_i32_1 = arith.constant 0 : i32
    return %2, %c0_i32_0 : i32, i32
  }
  func.func @transform_1(%arg0: i32, %arg1: i32) -> (i32, i32) {
    %c1_i32 = arith.constant 1 : i32
    %0 = arith.muli %arg0, %c1_i32 : i32
    %1 = arith.addi %0, %arg1 : i32
    %c0_i32 = arith.constant 0 : i32
    %2 = arith.minsi %1, %c0_i32 : i32
    %c0_i32_0 = arith.constant 0 : i32
    %c0_i32_1 = arith.constant 0 : i32
    return %2, %c0_i32_0 : i32, i32
  }
  func.func @transform_2(%arg0: i32, %arg1: i32) -> (i32, i32) {
    %c0_i32 = arith.constant 0 : i32
    %c0_i32_0 = arith.constant 0 : i32
    %c0_i32_1 = arith.constant 0 : i32
    return %c0_i32, %c0_i32_0 : i32, i32
  }
  func.func @transform_3(%arg0: i32, %arg1: i32) -> (i32, i32, i32) {
    %c0_i32 = arith.constant 0 : i32
    %c0_i32_0 = arith.constant 0 : i32
    %c0_i32_1 = arith.constant 0 : i32
    return %arg0, %c0_i32, %c0_i32_0 : i32, i32, i32
  }
}

</mosaic_0001>

<bundles_post_ra>
// kernel: binary_focal_loss.1
= control target key start
LH: loop header
LB: loop body
LE: loop exit
PB: predicated region body
PF: predicated region fallthrough
CT: control target
= control target key end

     0   :  { %s223_s0 = inlined_call_operand.vmem [shape: f32[16,128], index: 0, kind: input, shape index: {}]   ;;  %s224_s2 = inlined_call_operand.vmem [shape: f32[16,128], index: 2, kind: input, shape index: {}]   ;;  %s225_s1 = inlined_call_operand.vmem [shape: f32[16,128], index: 1, kind: input, shape index: {}]   ;;  %s226_s3 = inlined_call_operand.vmem [shape: f32[1,8,128], index: 3, kind: output, shape index: {}]  }
   0x1   :  { %v83_v0 = vld [vmem:[%s223_s0] sm:$0xff]  ;;  %v84_v1 = vld [vmem:[%s223_s0 + $0x8] sm:$0xff] }
   0x2   :  { %v87_v2 = vand.u32 2147483647, %v83_v0  ;;  %v88_v3 = vand.u32 2147483647, %v84_v1  ;;  %v119_v13 = vld [vmem:[%s224_s2] sm:$0xff]  ;;  %v120_v15 = vld [vmem:[%s224_s2 + $0x8] sm:$0xff] }
   0x3   :  { %v167_v16 = vadd.f32 -1.0, %v119_v13  ;;  %v85_v17 = vld [vmem:[%s225_s1] sm:$0xff]  ;;  %v168_v19 = vadd.f32 -1.0, %v120_v15  ;;  %v86_v20 = vld [vmem:[%s225_s1 + $0x8] sm:$0xff]  ;;  %v95_v21 = vsub.f32 0.0, %v83_v0  ;;  %v96_v24 = vsub.f32 0.0, %v84_v1 }
   0x4   :  { %v89_v4 = vsub.f32 0.0, %v87_v2  ;;  %v90_v5 = vsub.f32 0.0, %v88_v3  ;;  %v121_v32 = vsub.f32 1.0, %v85_v17  ;;  %v122_v36 = vsub.f32 1.0, %v86_v20 }
   0x5   :  { %v127_v26 = vmul.f32 %v167_v16, %v85_v17  ;;  %v128_v28 = vmul.f32 %v168_v19, %v86_v20  ;;  %v97_v30 = vmax.f32 %v95_v21, 0.0  ;;  %v98_v34 = vmax.f32 %v96_v24, 0.0 }
   0x6   :  { %v91_v6 = vmul.f32 1.442695, %v89_v4  ;;  %v93_v7 = vmul.f32 1.442695, %v90_v5  ;;  %v123_v43 = vmul.f32 %v121_v32, %v83_v0  ;;  %v124_v45 = vmul.f32 %v122_v36, %v84_v1 }
   0x7   :  { %v129_v38 = vadd.f32 1.0, %v127_v26  ;;  %v130_v40 = vadd.f32 1.0, %v128_v28 }
   0x8   :  { %170 = vpow2.f32 %v91_v6 }
   0x9   :  { %172 = vpow2.f32 %v93_v7 }
  0x12   :  { %v171_v8 = vpop.eup %170 }
  0x13   :  { %v173_v9 = vpop.eup %172  ;;  %v99_v10 = vadd.f32 1.0, %v171_v8  ;;  %v102_v12 = vmul.f32 -0.5, %v171_v8  ;;  %v105_v22 = vand.u32 2147483647, %v171_v8 }
  0x14   :  { %v108_v11 = vadd.f32 1.0, %v173_v9  ;;  %v111_v14 = vmul.f32 -0.5, %v173_v9  ;;  %v114_v25 = vand.u32 2147483647, %v173_v9 }
  0x15   :  { %174 = vlog2.f32 %v99_v10  ;;  %v103_v18 = vadd.f32 1.0, %v102_v12  ;;  %vm106_vm0 = vcmp.lt.f32.partialorder %v105_v22, 0.0004427343 }
  0x16   :  { %176 = vlog2.f32 %v108_v11  ;;  %v112_v23 = vadd.f32 1.0, %v111_v14  ;;  %vm115_vm1 = vcmp.lt.f32.partialorder %v114_v25, 0.0004427343 }
  0x17   :  { %v104_v27 = vmul.f32 %v171_v8, %v103_v18 }
  0x18   :  { %v113_v31 = vmul.f32 %v173_v9, %v112_v23 }
  0x1f   :  { %v175_v29 = vpop.eup %174 }
  0x20   :  { %v177_v33 = vpop.eup %176  ;;  %v101_v35 = vmul.f32 0.6931472, %v175_v29 }
  0x21   :  { %v110_v37 = vmul.f32 0.6931472, %v177_v33 }
  0x22   :  { %v107_v39 = vsel %vm106_vm0, %v104_v27, %v101_v35 }
  0x23   :  { %v116_v41 = vsel %vm115_vm1, %v113_v31, %v110_v37  ;;  %v117_v42 = vadd.f32 %v107_v39, %v97_v30 }
  0x24   :  { %v118_v44 = vadd.f32 %v116_v41, %v98_v34 }
  0x25   :  { %v131_v46 = vmul.f32 %v129_v38, %v117_v42 }
  0x26   :  { %v132_v47 = vmul.f32 %v130_v40, %v118_v44 }
  0x27   :  { %v133_v48 = vadd.f32 %v131_v46, %v123_v43 }
  0x28   :  { %v134_v49 = vadd.f32 %v132_v47, %v124_v45 }
  0x29   :  { %v135_v50 = vsub.f32 0.0, %v133_v48 }
  0x2a   :  { %v136_v51 = vsub.f32 0.0, %v134_v49 }
  0x2b   :  { %v137_v52 = vmul.f32 1.442695, %v135_v50 }
  0x2c   :  { %v139_v53 = vmul.f32 1.442695, %v136_v51 }
  0x2d   :  { %178 = vpow2.f32 %v137_v52 }
  0x2e   :  { %180 = vpow2.f32 %v139_v53 }
  0x37   :  { %v179_v54 = vpop.eup %178 }
  0x38   :  { %v181_v55 = vpop.eup %180  ;;  %v141_v56 = vsub.f32 1.0, %v179_v54 }
  0x39   :  { %v142_v57 = vsub.f32 1.0, %v181_v55 }
  0x3a   :  { %v143_v58 = vmul.f32 %v141_v56, %v141_v56 }
  0x3b   :  { %v144_v59 = vmul.f32 %v142_v57, %v142_v57 }
  0x3c   :  { %v145_v60 = vmul.f32 %v143_v58, %v133_v48 }
  0x3d   :  { %v146_v61 = vmul.f32 %v144_v59, %v134_v49 }
  0x3f   :  { %v148_v62 = vadd.f32 %v146_v61, %v145_v60 }
  0x41   :  { %150 = vst [vmem:[%s226_s3] sm:$0xff] %v148_v62 }

</bundles_post_ra>
